<compile_context>
chip_gen: v5e
topology: v5e:2x2
jax: 0.10.0
libtpu: 0.0.40
codegen_flags: <defaults>
</compile_context>

<pallas_src>
import functools
import math

import jax
import jax.numpy as jnp
from jax import lax
from jax.experimental import pallas as pl
from jax.experimental.pallas import tpu as pltpu


# ----------------------------- Pallas kernel ------------------------------ #
def _conv_lrelu_kernel(x_ref, w_ref, b_ref, o_ref, xp_ref, p_ref, *,
                       H, W, KH, KW, pad, lead, T, negative_slope):
    # x_ref : (1, Cin, H*W)     input image, flattened row-major per channel (f32)
    # w_ref : (Cout, KH*KW*Cin) spectral-normalized weights (im2col row order)
    # b_ref : (Cout, 1)         bias (f32)
    # o_ref : (1, Cout, L)      output rows [t*TH, (t+1)*TH), flattened (L=TH*W)
    # xp_ref: (Cin, Mh)         scratch: halo row window, Mh = L + border + lead
    #                           xp[:, i] == input_flat[t*L - lead + i] (or 0 OOB)
    # p_ref : (KH*KW*Cin, L)    scratch: im2col patch matrix
    Cin = x_ref.shape[1]
    HW = H * W
    L = p_ref.shape[1]
    Mh = xp_ref.shape[1]
    border = pad * (W + 1)
    cdt = xp_ref.dtype

    # --- halo scratch build (per step; cheap: O(Cin*(TH+2p)*W)) -------------
    # Zero only the small borders; the valid-row copy overwrites the rest.
    if lead > 0:
        xp_ref[:, :lead] = jnp.zeros((Cin, lead), dtype=cdt)
    if border > 0:
        xp_ref[:, Mh - border:] = jnp.zeros((Cin, border), dtype=cdt)

    if T == 1:
        # Whole image in one tile: interior sits between the two zero borders.
        xp_ref[:, lead:lead + HW] = x_ref[0, :, :].astype(cdt)
    else:
        t = pl.program_id(1)
        first = t == 0
        last = t == T - 1
        g = math.gcd(L, lead) if lead else L   # alignment of dynamic copy start

        @pl.when(first)
        def _():
            # rows [0, TH+pad): src starts at 0, dst leaves the leading zeros.
            xp_ref[:, lead:] = x_ref[0, :, 0:Mh - lead].astype(cdt)

        @pl.when(last)
        def _():
            # rows [t*TH - pad, H): trailing zeros stay zero.
            s = pl.multiple_of(t * L - lead, g)
            xp_ref[:, 0:L + lead] = x_ref[0, :, pl.ds(s, L + lead)].astype(cdt)

        if T > 2:
            @pl.when(jnp.logical_not(jnp.logical_or(first, last)))
            def _():
                s = pl.multiple_of(t * L - lead, g)
                xp_ref[...] = x_ref[0, :, pl.ds(s, Mh)].astype(cdt)

    # --- im2col patch build --------------------------------------------------
    # 'same' conv: each tap is one contiguous lane window of the halo buffer
    # plus a static left/right column-border mask (mask depends only on kw).
    col = lax.broadcasted_iota(jnp.int32, (1, L), 1) % W
    for kw in range(KW):
        lo, hi = pad - kw, W + pad - kw
        mask = ((col >= lo) & (col < hi)) if (lo > 0 or hi < W) else None
        for kh in range(KH):
            off = lead + (kh - pad) * W + (kw - pad)        # static, >= 0
            seg = xp_ref[:, off:off + L]                    # (Cin, L)
            if mask is not None:
                seg = jnp.where(mask, seg, jnp.zeros_like(seg))
            r = (kh * KW + kw) * Cin
            p_ref[r:r + Cin, :] = seg

    # --- single lane-dense MXU matmul + bias + LeakyReLU ---------------------
    acc = jnp.dot(w_ref[...], p_ref[...], preferred_element_type=jnp.float32)
    acc = acc + b_ref[...]                                  # (Cout,1) broadcast
    acc = jnp.where(acc > 0, acc, negative_slope * acc)     # LeakyReLU (any slope)
    o_ref[0] = acc.astype(o_ref.dtype)


def _pick_tile_rows(H, W, lead, vmem_est, budget, max_lanes=8192):
    """Largest output-row tile TH with TH|H, (TH*W)%128==0, halo-safe, and
    (if possible) within the VMEM budget and with L=TH*W <= max_lanes lanes."""
    cands = []
    for th in range(1, H + 1):
        if H % th:
            continue
        L = th * W
        if th != H and (L % 128 or L < lead):   # th==H (T=1) is always valid
            continue
        cands.append(th)
    fitting = [th for th in cands if vmem_est(th) <= budget]
    pool = fitting if fitting else cands
    small = [th for th in pool if th * W <= max_lanes]
    return max(small) if small else min(pool)


def conv2d_lrelu_pallas(x_flat, w_mat, b_col, *, H, W, KH, KW, pad,
                        negative_slope=0.2, tile_rows=None, compute_dtype=None):
    """'same' conv (stride 1, k == 2*pad+1) + bias + LeakyReLU, NCHW layout."""
    N, Cin, HW = x_flat.shape
    Cout, KK = w_mat.shape
    assert HW == H * W and KK == KH * KW * Cin

    cdt = jnp.dtype(compute_dtype) if compute_dtype is not None else x_flat.dtype
    border = pad * (W + 1)
    lead = ((border + 127) // 128) * 128 if border else 0   # 128-aligned border

    in_b = jnp.dtype(x_flat.dtype).itemsize
    c_b = jnp.dtype(cdt).itemsize

    try:  # per-core VMEM: 128 MiB on v5e/v6e, 64 MiB on v7x
        vmem_phys = int(pltpu.get_tpu_info().vmem_capacity_bytes)
    except Exception:
        vmem_phys = 64 << 20

    def vmem_est(th):
        L = th * W
        return (2 * Cin * HW * in_b                    # input block (2 buffers)
                + 2 * Cout * L * in_b                  # output block (2 buffers)
                + 2 * Cout * KK * c_b + 2 * Cout * 4   # resident weights / bias
                + Cin * (L + border + lead) * c_b      # halo scratch
                + KK * L * c_b)                        # im2col patch scratch

    if tile_rows is None:
        TH = _pick_tile_rows(H, W, lead, vmem_est, budget=(vmem_phys * 5) // 8)
    else:
        TH = int(tile_rows)
        assert H % TH == 0, "tile_rows must divide H"
        if TH != H:
            assert (TH * W) % 128 == 0 and TH * W >= lead, "invalid tile_rows"

    T = H // TH
    L = TH * W
    Mh = L + border + lead
    vmem_limit = int(min(max(vmem_est(TH) * 5 // 4, 32 << 20),
                         max(vmem_phys - (16 << 20), 32 << 20)))

    kernel = functools.partial(
        _conv_lrelu_kernel, H=H, W=W, KH=KH, KW=KW, pad=pad, lead=lead, T=T,
        negative_slope=negative_slope)

    return pl.pallas_call(
        kernel,
        out_shape=jax.ShapeDtypeStruct((N, Cout, HW), x_flat.dtype),
        grid=(N, T),
        in_specs=[
            pl.BlockSpec((1, Cin, HW), lambda n, t: (n, 0, 0)),
            pl.BlockSpec((Cout, KK), lambda n, t: (0, 0)),
            pl.BlockSpec((Cout, 1), lambda n, t: (0, 0)),
        ],
        out_specs=pl.BlockSpec((1, Cout, L), lambda n, t: (n, 0, t)),
        scratch_shapes=[
            pltpu.VMEM((Cin, Mh), cdt),      # halo row window (compute dtype)
            pltpu.VMEM((KK, L), cdt),        # im2col patch matrix
        ],
        compiler_params=pltpu.CompilerParams(
            dimension_semantics=("parallel", "parallel"),
            vmem_limit_bytes=vmem_limit),
    )(x_flat, w_mat.astype(cdt), b_col)


# ------------------------------ JAX glue ---------------------------------- #
def _l2normalize(v, eps=1e-12):
    return v / (jnp.linalg.norm(v) + eps)


def spectral_norm_weight(w_bar, u, v, power_iterations=1):
    """Replicates SpectralNorm._update_u_v (one power iteration by default).
    Note: u/v buffers are not persisted (inference semantics, not training)."""
    height = w_bar.shape[0]
    w_mat = w_bar.reshape(height, -1)
    for _ in range(power_iterations):
        v = _l2normalize(w_mat.T @ u)
        u = _l2normalize(w_mat @ v)
    sigma = u @ (w_mat @ v)
    return w_bar / sigma


def compare_gan_conv2d(x_nchw, params, *, padding=1, paddingmode="symmetric",
                       tile_rows=None, compute_dtype=None):
    """Forward pass of CompareGAN_Conv2d. Input/output are NCHW like PyTorch."""
    # TODO(synk): stride > 1 not implemented (module default stride=1).
    w = spectral_norm_weight(params["w_bar"], params["u"], params["v"])
    Cout, Cin, KH, KW = w.shape

    if padding and paddingmode != "symmetric":
        # TODO(synk): asymmetric mode still does one jnp.pad HBM pass; it is
        # equivalent to symmetric padding of an input extended by one zero
        # column/row on the right/bottom.
        x_nchw = jnp.pad(x_nchw, ((0, 0), (0, 0), (0, 1), (0, 1)))
    if KH != 2 * padding + 1 or KW != 2 * padding + 1:
        # TODO(synk): only 'same'-style convs (kernel == 2*padding+1, stride 1)
        # are implemented in the Pallas kernel.
        raise NotImplementedError("only kernel_size == 2*padding+1 supported")

    N, _, H, W = x_nchw.shape
    # OIHW -> (O, KH, KW, I) -> (O, KH*KW*I): rows match the kernel's im2col order.
    w_mat = jnp.transpose(w, (0, 2, 3, 1)).reshape(Cout, KH * KW * Cin)
    b_col = params["b"].reshape(Cout, 1).astype(jnp.float32)
    x_flat = x_nchw.reshape(N, Cin, H * W)          # free row-major reshape
    y_flat = conv2d_lrelu_pallas(x_flat, w_mat, b_col,
                                 H=H, W=W, KH=KH, KW=KW, pad=padding,
                                 tile_rows=tile_rows, compute_dtype=compute_dtype)
    return y_flat.reshape(N, Cout, H, W)


# ----------------------------- reference ---------------------------------- #
def compare_gan_conv2d_ref(x_nchw, params, *, padding=1, paddingmode="symmetric"):
    if padding:
        if paddingmode == "symmetric":
            pt, pleft, pright, pb = padding, padding, padding, padding
        else:
            pt, pleft, pright, pb = padding, padding, padding + 1, padding + 1
        x_nchw = jnp.pad(x_nchw, ((0, 0), (0, 0), (pt, pb), (pleft, pright)))
    w = spectral_norm_weight(params["w_bar"], params["u"], params["v"])
    y = lax.conv_general_dilated(
        x_nchw, w, window_strides=(1, 1), padding="VALID",
        dimension_numbers=("NCHW", "OIHW", "NCHW"))
    y = y + params["b"][None, :, None, None]
    return jnp.where(y >= 0, y, 0.2 * y)


# -------------------------------- main ------------------------------------ #
if __name__ == "__main__":
    key = jax.random.PRNGKey(0)

    def make_params(k, cin, cout, ks=3, initstd=0.02):
        k_w, k_b, k_u, k_v = jax.random.split(k, 4)
        w_bar = initstd * jax.random.normal(k_w, (cout, cin, ks, ks), jnp.float32)
        b = 0.01 * jax.random.normal(k_b, (cout,), jnp.float32)
        u = _l2normalize(jax.random.normal(k_u, (cout,), jnp.float32))
        v = _l2normalize(jax.random.normal(k_v, (cin * ks * ks,), jnp.float32))
        return {"w_bar": w_bar, "b": b, "u": u, "v": v}

    k_x1, k_x2, k_p1, k_p2 = jax.random.split(key, 4)

    # Case 1: module-default small shapes, f32 compute, strict tolerance.
    N, cin, cout, H, W = 2, 4, 8, 16, 16
    x1 = jax.random.normal(k_x1, (N, cin, H, W), jnp.float32)
    p1 = make_params(k_p1, cin, cout)
    y1 = jax.block_until_ready(compare_gan_conv2d(x1, p1))
    y1_ref = jax.block_until_ready(compare_gan_conv2d_ref(x1, p1))
    assert y1.shape == (N, cout, H, W), y1.shape
    assert jnp.allclose(y1, y1_ref, rtol=1e-4, atol=1e-5), float(
        jnp.max(jnp.abs(y1 - y1_ref)))

    # Case 2: multi-row-tile path (first / interior / last halo branches), f32.
    N2, cin2, cout2, H2, W2 = 2, 4, 8, 32, 32
    x2 = jax.random.normal(k_x2, (N2, cin2, H2, W2), jnp.float32)
    p2 = make_params(k_p2, cin2, cout2)
    y2 = jax.block_until_ready(compare_gan_conv2d(x2, p2, tile_rows=8))
    y2_ref = jax.block_until_ready(compare_gan_conv2d_ref(x2, p2))
    assert jnp.allclose(y2, y2_ref, rtol=1e-4, atol=1e-5), float(
        jnp.max(jnp.abs(y2 - y2_ref)))

    # Case 3: bf16 weights / scratch (f32 MXU accumulate), loose tolerance.
    y3 = jax.block_until_ready(
        compare_gan_conv2d(x2, p2, tile_rows=8, compute_dtype=jnp.bfloat16))
    assert jnp.allclose(y3, y2_ref, rtol=5e-2, atol=3e-2), float(
        jnp.max(jnp.abs(y3 - y2_ref)))

    print("KERNEL_OK")
</pallas_src>

<mosaic_0001>
module attributes {stable_mosaic.version = 11 : i64} {
  func.func @_conv_lrelu_kernel(%arg0: i32, %arg1: i32, %arg2: memref<1x4x256xf32, #tpu.memory_space<vmem>>, %arg3: memref<8x36xf32, #tpu.memory_space<vmem>>, %arg4: memref<8x1xf32, #tpu.memory_space<vmem>>, %arg5: memref<1x8x256xf32, #tpu.memory_space<vmem>>, %arg6: memref<4x401xf32, #tpu.memory_space<vmem>>, %arg7: memref<36x256xf32, #tpu.memory_space<vmem>>) attributes {dimension_semantics = [#tpu.dimension_semantics<parallel>, #tpu.dimension_semantics<parallel>], iteration_bounds = array<i64: 2, 1>, scalar_prefetch = 0 : i64, scratch_operands = 2 : i64, tpu.core_type = #tpu.core_type<tc>, window_params = [{transform_indices = @transform_0, window_bounds = array<i64: 1, 4, 256>}, {pipeline_mode = #tpu.pipeline_mode<synchronous>, transform_indices = @transform_1, window_bounds = array<i64: 8, 36>}, {pipeline_mode = #tpu.pipeline_mode<synchronous>, transform_indices = @transform_2, window_bounds = array<i64: 8, 1>}, {transform_indices = @transform_3, window_bounds = array<i64: 1, 8, 256>}]} {
    %cst = arith.constant 0.000000e+00 : f32
    %0 = vector.broadcast %cst : f32 to vector<4x128xf32>
    %c0 = arith.constant 0 : index
    %c0_0 = arith.constant 0 : index
    %1 = vector.load %arg6[%c0, %c0_0] : memref<4x401xf32, #tpu.memory_space<vmem>>, vector<4x128xf32>
    tpu.vector_store %arg6[%c0, %c0_0], %0 {strides = array<i32>} : memref<4x401xf32, #tpu.memory_space<vmem>>, vector<4x128xf32>,
    %cst_1 = arith.constant 0.000000e+00 : f32
    %2 = vector.broadcast %cst_1 : f32 to vector<4x17xf32>
    %c0_2 = arith.constant 0 : index
    %c384 = arith.constant 384 : index
    %3 = vector.load %arg6[%c0_2, %c384] : memref<4x401xf32, #tpu.memory_space<vmem>>, vector<4x17xf32>
    tpu.vector_store %arg6[%c0_2, %c384], %2 {strides = array<i32>} : memref<4x401xf32, #tpu.memory_space<vmem>>, vector<4x17xf32>,
    %c0_3 = arith.constant 0 : index
    %c0_4 = arith.constant 0 : index
    %c0_5 = arith.constant 0 : index
    %4 = vector.load %arg2[%c0_3, %c0_4, %c0_5] : memref<1x4x256xf32, #tpu.memory_space<vmem>>, vector<1x4x256xf32>
    %5 = vector.shape_cast %4 : vector<1x4x256xf32> to vector<4x256xf32>
    %c0_6 = arith.constant 0 : index
    %c128 = arith.constant 128 : index
    %6 = vector.load %arg6[%c0_6, %c128] : memref<4x401xf32, #tpu.memory_space<vmem>>, vector<4x256xf32>
    tpu.vector_store %arg6[%c0_6, %c128], %5 {strides = array<i32>} : memref<4x401xf32, #tpu.memory_space<vmem>>, vector<4x256xf32>,
    %7 = tpu.iota {dimensions = array<i32: 1>} : vector<1x256xi32>
    %c16_i32 = arith.constant 16 : i32
    %c0_i32 = arith.constant 0 : i32
    %8 = arith.cmpi eq, %c16_i32, %c0_i32 : i32
    %c1_i32 = arith.constant 1 : i32
    %9 = arith.select %8, %c1_i32, %c16_i32 : i32
    %10 = vector.broadcast %9 : i32 to vector<1x256xi32>
    %11 = arith.remsi %7, %10 : vector<1x256xi32>
    %c0_i32_7 = arith.constant 0 : i32
    %12 = vector.broadcast %c0_i32_7 : i32 to vector<1x256xi32>
    %13 = arith.cmpi ne, %11, %12 : vector<1x256xi32>
    %c0_i32_8 = arith.constant 0 : i32
    %14 = vector.broadcast %c0_i32_8 : i32 to vector<1x256xi32>
    %15 = arith.cmpi slt, %11, %14 : vector<1x256xi32>
    %c0_i32_9 = arith.constant 0 : i32
    %16 = arith.cmpi slt, %9, %c0_i32_9 : i32
    %17 = vector.broadcast %16 : i1 to vector<1x256xi1>
    %18 = vector.broadcast %17 : vector<1x256xi1> to vector<1x256xi1>
    %19 = arith.xori %15, %18 : vector<1x256xi1>
    %20 = arith.andi %19, %13 : vector<1x256xi1>
    %21 = vector.broadcast %9 : i32 to vector<1x256xi32>
    %22 = arith.addi %11, %21 : vector<1x256xi32>
    %23 = arith.select %20, %22, %11 : vector<1x256xi1>, vector<1x256xi32>
    %c1_i32_10 = arith.constant 1 : i32
    %24 = vector.broadcast %c1_i32_10 : i32 to vector<1x256xi32>
    %25 = arith.cmpi sge, %23, %24 : vector<1x256xi32>
    %c17_i32 = arith.constant 17 : i32
    %26 = vector.broadcast %c17_i32 : i32 to vector<1x256xi32>
    %27 = arith.cmpi slt, %23, %26 : vector<1x256xi32>
    %28 = arith.andi %25, %27 : vector<1x256xi1>
    %c0_11 = arith.constant 0 : index
    %c111 = arith.constant 111 : index
    %29 = vector.load %arg6[%c0_11, %c111] : memref<4x401xf32, #tpu.memory_space<vmem>>, vector<4x256xf32>
    %cst_12 = arith.constant 0.000000e+00 : f32
    %30 = vector.broadcast %cst_12 : f32 to vector<4x256xf32>
    %31 = vector.shape_cast %28 : vector<1x256xi1> to vector<1x256xi1>
    %32 = vector.broadcast %31 : vector<1x256xi1> to vector<4x256xi1>
    %33 = arith.select %32, %29, %30 : vector<4x256xi1>, vector<4x256xf32>
    %c0_13 = arith.constant 0 : index
    %c0_14 = arith.constant 0 : index
    %34 = vector.load %arg7[%c0_13, %c0_14] : memref<36x256xf32, #tpu.memory_space<vmem>>, vector<4x256xf32>
    tpu.vector_store %arg7[%c0_13, %c0_14], %33 {strides = array<i32>} : memref<36x256xf32, #tpu.memory_space<vmem>>, vector<4x256xf32>,
    %c0_15 = arith.constant 0 : index
    %c127 = arith.constant 127 : index
    %35 = vector.load %arg6[%c0_15, %c127] : memref<4x401xf32, #tpu.memory_space<vmem>>, vector<4x256xf32>
    %cst_16 = arith.constant 0.000000e+00 : f32
    %36 = vector.broadcast %cst_16 : f32 to vector<4x256xf32>
    %37 = vector.shape_cast %28 : vector<1x256xi1> to vector<1x256xi1>
    %38 = vector.broadcast %37 : vector<1x256xi1> to vector<4x256xi1>
    %39 = arith.select %38, %35, %36 : vector<4x256xi1>, vector<4x256xf32>
    %c12 = arith.constant 12 : index
    %c0_17 = arith.constant 0 : index
    %40 = vector.load %arg7[%c12, %c0_17] : memref<36x256xf32, #tpu.memory_space<vmem>>, vector<4x256xf32>
    tpu.vector_store %arg7[%c12, %c0_17], %39 {strides = array<i32>} : memref<36x256xf32, #tpu.memory_space<vmem>>, vector<4x256xf32>,
    %c0_18 = arith.constant 0 : index
    %c143 = arith.constant 143 : index
    %41 = vector.load %arg6[%c0_18, %c143] : memref<4x401xf32, #tpu.memory_space<vmem>>, vector<4x256xf32>
    %cst_19 = arith.constant 0.000000e+00 : f32
    %42 = vector.broadcast %cst_19 : f32 to vector<4x256xf32>
    %43 = vector.shape_cast %28 : vector<1x256xi1> to vector<1x256xi1>
    %44 = vector.broadcast %43 : vector<1x256xi1> to vector<4x256xi1>
    %45 = arith.select %44, %41, %42 : vector<4x256xi1>, vector<4x256xf32>
    %c24 = arith.constant 24 : index
    %c0_20 = arith.constant 0 : index
    %46 = vector.load %arg7[%c24, %c0_20] : memref<36x256xf32, #tpu.memory_space<vmem>>, vector<4x256xf32>
    tpu.vector_store %arg7[%c24, %c0_20], %45 {strides = array<i32>} : memref<36x256xf32, #tpu.memory_space<vmem>>, vector<4x256xf32>,
    %c0_21 = arith.constant 0 : index
    %c112 = arith.constant 112 : index
    %47 = vector.load %arg6[%c0_21, %c112] : memref<4x401xf32, #tpu.memory_space<vmem>>, vector<4x256xf32>
    %c4 = arith.constant 4 : index
    %c0_22 = arith.constant 0 : index
    %48 = vector.load %arg7[%c4, %c0_22] : memref<36x256xf32, #tpu.memory_space<vmem>>, vector<4x256xf32>
    tpu.vector_store %arg7[%c4, %c0_22], %47 {strides = array<i32>} : memref<36x256xf32, #tpu.memory_space<vmem>>, vector<4x256xf32>,
    %c0_23 = arith.constant 0 : index
    %c128_24 = arith.constant 128 : index
    %49 = vector.load %arg6[%c0_23, %c128_24] : memref<4x401xf32, #tpu.memory_space<vmem>>, vector<4x256xf32>
    %c16 = arith.constant 16 : index
    %c0_25 = arith.constant 0 : index
    %50 = vector.load %arg7[%c16, %c0_25] : memref<36x256xf32, #tpu.memory_space<vmem>>, vector<4x256xf32>
    tpu.vector_store %arg7[%c16, %c0_25], %49 {strides = array<i32>} : memref<36x256xf32, #tpu.memory_space<vmem>>, vector<4x256xf32>,
    %c0_26 = arith.constant 0 : index
    %c144 = arith.constant 144 : index
    %51 = vector.load %arg6[%c0_26, %c144] : memref<4x401xf32, #tpu.memory_space<vmem>>, vector<4x256xf32>
    %c28 = arith.constant 28 : index
    %c0_27 = arith.constant 0 : index
    %52 = vector.load %arg7[%c28, %c0_27] : memref<36x256xf32, #tpu.memory_space<vmem>>, vector<4x256xf32>
    tpu.vector_store %arg7[%c28, %c0_27], %51 {strides = array<i32>} : memref<36x256xf32, #tpu.memory_space<vmem>>, vector<4x256xf32>,
    %c-1_i32 = arith.constant -1 : i32
    %53 = vector.broadcast %c-1_i32 : i32 to vector<1x256xi32>
    %54 = arith.cmpi sge, %23, %53 : vector<1x256xi32>
    %c15_i32 = arith.constant 15 : i32
    %55 = vector.broadcast %c15_i32 : i32 to vector<1x256xi32>
    %56 = arith.cmpi slt, %23, %55 : vector<1x256xi32>
    %57 = arith.andi %54, %56 : vector<1x256xi1>
    %c0_28 = arith.constant 0 : index
    %c113 = arith.constant 113 : index
    %58 = vector.load %arg6[%c0_28, %c113] : memref<4x401xf32, #tpu.memory_space<vmem>>, vector<4x256xf32>
    %cst_29 = arith.constant 0.000000e+00 : f32
    %59 = vector.broadcast %cst_29 : f32 to vector<4x256xf32>
    %60 = vector.shape_cast %57 : vector<1x256xi1> to vector<1x256xi1>
    %61 = vector.broadcast %60 : vector<1x256xi1> to vector<4x256xi1>
    %62 = arith.select %61, %58, %59 : vector<4x256xi1>, vector<4x256xf32>
    %c8 = arith.constant 8 : index
    %c0_30 = arith.constant 0 : index
    %63 = vector.load %arg7[%c8, %c0_30] : memref<36x256xf32, #tpu.memory_space<vmem>>, vector<4x256xf32>
    tpu.vector_store %arg7[%c8, %c0_30], %62 {strides = array<i32>} : memref<36x256xf32, #tpu.memory_space<vmem>>, vector<4x256xf32>,
    %c0_31 = arith.constant 0 : index
    %c129 = arith.constant 129 : index
    %64 = vector.load %arg6[%c0_31, %c129] : memref<4x401xf32, #tpu.memory_space<vmem>>, vector<4x256xf32>
    %cst_32 = arith.constant 0.000000e+00 : f32
    %65 = vector.broadcast %cst_32 : f32 to vector<4x256xf32>
    %66 = vector.shape_cast %57 : vector<1x256xi1> to vector<1x256xi1>
    %67 = vector.broadcast %66 : vector<1x256xi1> to vector<4x256xi1>
    %68 = arith.select %67, %64, %65 : vector<4x256xi1>, vector<4x256xf32>
    %c20 = arith.constant 20 : index
    %c0_33 = arith.constant 0 : index
    %69 = vector.load %arg7[%c20, %c0_33] : memref<36x256xf32, #tpu.memory_space<vmem>>, vector<4x256xf32>
    tpu.vector_store %arg7[%c20, %c0_33], %68 {strides = array<i32>} : memref<36x256xf32, #tpu.memory_space<vmem>>, vector<4x256xf32>,
    %c0_34 = arith.constant 0 : index
    %c145 = arith.constant 145 : index
    %70 = vector.load %arg6[%c0_34, %c145] : memref<4x401xf32, #tpu.memory_space<vmem>>, vector<4x256xf32>
    %cst_35 = arith.constant 0.000000e+00 : f32
    %71 = vector.broadcast %cst_35 : f32 to vector<4x256xf32>
    %72 = vector.shape_cast %57 : vector<1x256xi1> to vector<1x256xi1>
    %73 = vector.broadcast %72 : vector<1x256xi1> to vector<4x256xi1>
    %74 = arith.select %73, %70, %71 : vector<4x256xi1>, vector<4x256xf32>
    %c32 = arith.constant 32 : index
    %c0_36 = arith.constant 0 : index
    %75 = vector.load %arg7[%c32, %c0_36] : memref<36x256xf32, #tpu.memory_space<vmem>>, vector<4x256xf32>
    tpu.vector_store %arg7[%c32, %c0_36], %74 {strides = array<i32>} : memref<36x256xf32, #tpu.memory_space<vmem>>, vector<4x256xf32>,
    %c0_37 = arith.constant 0 : index
    %c0_38 = arith.constant 0 : index
    %76 = vector.load %arg3[%c0_37, %c0_38] : memref<8x36xf32, #tpu.memory_space<vmem>>, vector<8x36xf32>
    %c0_39 = arith.constant 0 : index
    %c0_40 = arith.constant 0 : index
    %77 = vector.load %arg7[%c0_39, %c0_40] : memref<36x256xf32, #tpu.memory_space<vmem>>, vector<36x256xf32>
    %cst_41 = arith.constant dense<0.000000e+00> : vector<8x256xf32>
    %78 = tpu.matmul %76, %77, %cst_41 {dimension_numbers = #tpu.dot_dimension_numbers<[1], [0], [0], [1], [0, 0, 1, 1], [], []>} : vector<8x36xf32>, vector<36x256xf32>, vector<8x256xf32> -> vector<8x256xf32>
    %c0_42 = arith.constant 0 : index
    %c0_43 = arith.constant 0 : index
    %79 = vector.load %arg4[%c0_42, %c0_43] : memref<8x1xf32, #tpu.memory_space<vmem>>, vector<8x1xf32>
    %80 = vector.broadcast %79 : vector<8x1xf32> to vector<8x256xf32>
    %81 = arith.addf %78, %80 : vector<8x256xf32>
    %cst_44 = arith.constant 0.000000e+00 : f32
    %82 = vector.broadcast %cst_44 : f32 to vector<8x256xf32>
    %83 = arith.cmpf ogt, %81, %82 : vector<8x256xf32>
    %cst_45 = arith.constant 2.000000e-01 : f32
    %84 = vector.broadcast %cst_45 : f32 to vector<8x256xf32>
    %85 = arith.mulf %84, %81 : vector<8x256xf32>
    %86 = arith.select %83, %81, %85 : vector<8x256xi1>, vector<8x256xf32>
    %c0_46 = arith.constant 0 : index
    %c0_47 = arith.constant 0 : index
    %c0_48 = arith.constant 0 : index
    %87 = vector.load %arg5[%c0_46, %c0_47, %c0_48] : memref<1x8x256xf32, #tpu.memory_space<vmem>>, vector<1x8x256xf32>
    %88 = vector.shape_cast %87 : vector<1x8x256xf32> to vector<8x256xf32>
    %89 = vector.shape_cast %86 : vector<8x256xf32> to vector<1x8x256xf32>
    tpu.vector_store %arg5[%c0_46, %c0_47, %c0_48], %89 {strides = array<i32>} : memref<1x8x256xf32, #tpu.memory_space<vmem>>, vector<1x8x256xf32>,
    return
  }
  func.func @transform_0(%arg0: i32, %arg1: i32) -> (i32, i32, i32) {
    %c0_i32 = arith.constant 0 : i32
    %c0_i32_0 = arith.constant 0 : i32
    %c0_i32_1 = arith.constant 0 : i32
    return %arg0, %c0_i32, %c0_i32_0 : i32, i32, i32
  }
  func.func @transform_1(%arg0: i32, %arg1: i32) -> (i32, i32) {
    %c0_i32 = arith.constant 0 : i32
    %c0_i32_0 = arith.constant 0 : i32
    %c0_i32_1 = arith.constant 0 : i32
    return %c0_i32, %c0_i32_0 : i32, i32
  }
  func.func @transform_2(%arg0: i32, %arg1: i32) -> (i32, i32) {
    %c0_i32 = arith.constant 0 : i32
    %c0_i32_0 = arith.constant 0 : i32
    %c0_i32_1 = arith.constant 0 : i32
    return %c0_i32, %c0_i32_0 : i32, i32
  }
  func.func @transform_3(%arg0: i32, %arg1: i32) -> (i32, i32, i32) {
    %c0_i32 = arith.constant 0 : i32
    %c0_i32_0 = arith.constant 0 : i32
    return %arg0, %c0_i32, %arg1 : i32, i32, i32
  }
}

</mosaic_0001>

<bundles_post_ra>
// kernel: tpu_custom_call.1
= control target key start
LH: loop header
LB: loop body
LE: loop exit
PB: predicated region body
PF: predicated region fallthrough
CT: control target
= control target key end

     0   :  { %8 = vsyncpa [#allocation5], 0  ;;  %s1077_s0 = inlined_call_operand.hbm [shape: f32[2,4,256], index: 0, kind: input, shape index: {}]   ;;  %s1078_s1 = inlined_call_operand.vmem [shape: f32[8,36], index: 1, kind: input, shape index: {}]   ;;  %s1079_s2 = inlined_call_operand.vmem [shape: f32[8,1], index: 2, kind: input, shape index: {}]   ;;  %s1080_s3 = inlined_call_operand.hbm [shape: f32[2,8,256], index: 3, kind: output, shape index: {}]  }
   0x1   :  { %10 = vsyncpa [#allocation5 + $0x1], 0 }
   0x2   :  { %11 = vsyncpa [#allocation6], 0 }
   0x3   :  { %13 = vsyncpa [#allocation6 + $0x1], 0  ;;  %s889_s12 = smov 0   ;;  %s891_s13 = smov 0  }
   0x4   :  { %s893_s14 = smov 0   ;;  %s895_s15 = smov 0  }
   0x5   :  { %s897_s16 = smov 0   ;;  %s899_s17 = smov 0  }
   0x6 LB: > { %s651_s18 = sadd.s32 4294967295, %s857_s17   ;;  %s652_s19 = sadd.s32 4294967294, %s857_s17   ;;  %s857_s17 = sphi %s899_s17, %s19_s17   ;;  %s853_s16 = sphi %s897_s16, %s1097_s16   ;;  %s849_s15 = sphi %s895_s15, %s1096_s15   ;;  %s845_s14 = sphi %s893_s14, %s1095_s14   ;;  %s841_s13 = sphi %s891_s13, %s1094_s13   ;;  %s837_s12 = sphi %s889_s12, %s1093_s12  }
   0x7   : > { %s31_s20 = sadd.s32 1, %s853_s16  ;;  %s38_s21 = sadd.s32 1, %s845_s14 }
   0x8   : > { %p33_p0 = scmp.ge.s32.totalorder %s31_s20, 2  ;;  %p45_p1 = scmp.ne.s32.totalorder %s845_s14, %s841_s13 }
   0x9   : > { %p46_p2 = scmp.eq.s32.totalorder %s857_s17, 0  ;;  %p51_p3 = scmp.ne.s32.totalorder %s841_s13, %s837_s12 }
   0xa   : > { %s1099_s20 = smov (%p33_p0, %s31_s20), 0  ;;  %p52_p5 = scmp.eq.s32.totalorder %s651_s18, 0 }
   0xb   : > { %p930_p4 = por %p46_p2, %p45_p1  ;;  %s35_s23 = ssub.s32 %s853_s16, %s1099_s20 }
   0xc   : > { %p119_p6 = scmp.eq.s32.totalorder %s651_s18, 1  ;;  %p36_p7 = scmp.eq.s32.totalorder %s35_s23, 0 }
   0xd   : > { %p936_p8 = por %p52_p5, %p51_p3  ;;  %p125_p10 = scmp.eq.s32.totalorder %s652_s19, 1 }
   0xe   : > { %p940_p9 = por %p119_p6, %p45_p1  ;;  %p654_p12 = scmp.ge.s32.totalorder %s857_s17, 2 }
   0xf   : > { %s945_s26 = scalar_select %p36_p7, %s845_s14, %s38_s21  }
  0x10   : > { %p947_p11 = por %p125_p10, %p51_p3  ;;  %p684_p13 = scmp.lt.s32.totalorder %s857_s17, 2 }
  0x11   : > { %s151_s28 = sand.u32 1, %s845_s14   ;;  %s670_s30 = sshll.u32 %s853_s16, 3 }
  0x12   : > { %s655_s29 = sshll.u32 %s151_s28, 3  ;;  %s160_s6 = scalar_lea.hbm %s1077_s0, %s670_s30 }
  0x13   : > { %s155_s7 = scalar_lea.vmem [#allocation4], %s655_s29  ;;  %s162_s9 = sshll.u32 %s160_s6, 4  ;;  %s163_s9 = int_to_ptr.hbm [resolvable:$true] %s162_s9 }
  0x14   : > { %s164_s8 = sshll.u32 %s155_s7, 4  ;;  %p677_p0 = pnand %p684_p13, %p930_p4  ;;  %s165_s8 = int_to_ptr.vmem [resolvable:$true] %s164_s8 }
  0x15   : > { %p658_p1 = scmp.ge.s32.totalorder %s857_s17, 1  ;;  %p169_p2 = scmp.lt.s32.totalorder %s857_s17, 3 }
  0x16   : > { %s152_s10 = scalar_lea.sflag [#allocation5], %s151_s28 }
  0x17   : > { %679 = dma.hbm_to_vmem [thread:$0]  (!%p677_p0), %s163_s9, 128, %s165_s8, %s152_s10  }
  0x18   : > { %p170_p3 = pnand %p658_p1, %p169_p2 }
  0x19   : > { %s963_s11 = sand.u32 (!%p170_p3), 1, %s841_s13  }
  0x1a   : > { %173 = sbr.rel (%p170_p3) target bundleno = 398 (0x18e), region = 32  ;;  %s659_s18 = sshll.u32 (!%p170_p3), %s963_s11, 3 }
  0x1b   : > { %s176_s19 = scalar_lea.sflag (!%p170_p3), [#allocation5], %s963_s11  ;;  %s179_s21 = scalar_lea.vmem (!%p170_p3), [#allocation4], %s659_s18 }
  0x1f   : > { %828 = dma.done.wait (%p936_p8), %s176_s19, 128  }
  0x20   : > { %830 = vsyncadd (%p936_p8), %s176_s19, 4294967168  ;;  %vm205_vm0 = vcmask 134144   ;;  %v859_v0 = vmov 0.0   ;;  %v971_v1 = vld [vmem:[%s179_s21] sm:$0xff]  ;;  %s860_s22 = smov 1   ;;  %s861_s23 = smov 113   ;;  %v209_v38 = vlaneseq }
  0x21   : > { %204 = vst [vmem:[#allocation2] sm:$0xf] %v859_v0  ;;  %s862_s24 = smov 112   ;;  %s863_s28 = smov 15   ;;  %vm318_vm1 = vcmask 924672   ;;  %vm287_vm3 = vcmask 7168  }
  0x22   : > { %206 = vst.msk [vmem:[#allocation2 + $0xc] sm:$0xf] %vm205_vm0, %v859_v0  ;;  %s864_s29 = smov 127   ;;  %s865_s30 = smov 111   ;;  %v210_v39 = vand.u32 127, %v209_v38  ;;  %vm377_vm5 = vcmask 916480  }
  0x23   : > { %208 = vst [vmem:[#allocation2 + $0x4] sm:$0xff] %v971_v1  ;;  %s866_s4 = smov 17   ;;  %s867_s5 = smov 16   ;;  %vm410_vm6 = vcmask 121856   ;;  %vm435_vm9 = vcmask 1039360   ;;  %vm466_vm10 = vcmask 908288  }
  0x24   : > { %v211_v41 = vadd.s32 128, %v210_v39  ;;  %v216_v46 = vand.u32 15, %v210_v39  ;;  %vm262_vm11 = vcmask 138240   ;;  %vm496_vm12 = vcmask 1043456   ;;  %v475_v48 = vld [vmem:[%s1078_s1] sm:$0xff]  ;;  %s660_s10 = sshll.u32 %s963_s11, 4 }
  0x25   : > { %vm344_vm13 = vcmask 130048   ;;  %vm492_vm14 = vcmask 293888   ;;  %s671_s18 = sshll.u32 %s849_s15, 4  ;;  %s552_s15 = scalar_lea.sflag [#allocation6], %s963_s11 }
  0x26   : > { %v223_v42 = vand.u32 15, %v211_v41  ;;  %vm995_vm4 = vcmp.ge.s32.totalorder %v216_v46, 1  ;;  %vm1010_vm8 = vcmp.lt.s32.totalorder %v216_v46, 15  ;;  %s795_s6 = scalar_lea.hbm %s1080_s3, 32 }
  0x28   : > { %vm988_vm2 = vcmp.ge.s32.totalorder %v223_v42, 1  ;;  %vm1006_vm7 = vcmp.lt.s32.totalorder %v223_v42, 15 }
  0x29   : > { %v303_v8 = vld [vmem:[#allocation2 + $0xc] sm:$0xf] }
  0x2a   : > { %v242_v2 = vld [vmem:[#allocation2] sm:$0xff]  ;;  %v243_v3 = vld [vmem:[#allocation2 + $0x8] sm:$0xf]  ;;  %v361_v16 = vld [vmem:[#allocation2 + $0xc] sm:$0xf] }
  0x2b   : > { %250 = vst [vmem:[#allocation1] ss:$2 sm:$0xff] %v242_v2  ;;  %v272_v4 = vld [vmem:[#allocation2 + $0x8] sm:$0xf]  ;;  %v420_v26 = vld [vmem:[#allocation2 + $0xc] sm:$0xf] }
  0x2c   : > { %252 = vst [vmem:[#allocation1 + $0x10] ss:$2 sm:$0xff] %v243_v3  ;;  %v328_v12 = vld [vmem:[#allocation2 + $0x8] sm:$0xf]  ;;  %v451_v30 = vld [vmem:[#allocation2 + $0xc] sm:$0xf] }
  0x2d   : > { %v391_v20 = vld [vmem:[#allocation2 + $0x8] sm:$0xf] }
  0x32   : > { %v974_v5 = vld.sshfl [vmem:[#allocation1] sm:$0xff pattern:$0x75316420]  ;;  %v976_v6 = vld.sshfl [vmem:[#allocation1 + $0x8] sm:$0xff pattern:$0x75316420] }
  0x33   : > { %275 = vst [vmem:[#allocation1] ss:$2 sm:$0xff] %v242_v2  ;;  %v978_v7 = vld.sshfl [vmem:[#allocation1 + $0x10] sm:$0xff pattern:$0x75316420] }
  0x34   : > { %277 = vst [vmem:[#allocation1 + $0x10] ss:$2 sm:$0xff] %v272_v4 }
  0x3a   : > { %v279_v9 = vld.sshfl [vmem:[#allocation1 + $0x8] sm:$0xff pattern:$0x75316420]  ;;  %v278_v10 = vld.sshfl [vmem:[#allocation1] sm:$0xff pattern:$0x75316420] }
  0x3b   : > { %283 = vrot.lane.b32.xlu1 %v279_v9, %s860_s22  ;;  %281 = vrot.lane.b32.xlu0 %v278_v10, %s860_s22  ;;  %306 = vst [vmem:[#allocation1] ss:$2 sm:$0xff] %v971_v1  ;;  %v280_v11 = vld.sshfl [vmem:[#allocation1 + $0x10] sm:$0xff pattern:$0x75316420] }
  0x3c   : > { %285 = vrot.lane.b32.xlu2 %v280_v11, %s860_s22  ;;  %308 = vst [vmem:[#allocation1 + $0x10] ss:$2 sm:$0xff] %v303_v8  ;;  %s565_s22 = scalar_lea.hbm %s1080_s3, %s671_s18 }
  0x42   : > { %v309_v13 = vld.sshfl [vmem:[#allocation1] sm:$0xff pattern:$0x75316420]  ;;  %v310_v14 = vld.sshfl [vmem:[#allocation1 + $0x8] sm:$0xff pattern:$0x75316420] }
  0x43   : > { %312 = vrot.lane.b32.xlu1 %v309_v13, %s861_s23  ;;  %332 = vst [vmem:[#allocation1 + $0x1] ss:$2 sm:$0xff] %v242_v2  ;;  %v311_v15 = vld.sshfl [vmem:[#allocation1 + $0x10] sm:$0xff pattern:$0x75316420] }
  0x44   : > { %314 = vrot.lane.b32.xlu2 %v310_v14, %s861_s23  ;;  %334 = vst [vmem:[#allocation1 + $0x11] ss:$2 sm:$0xff] %v328_v12 }
  0x4a   : > { %v335_v17 = vld.sshfl [vmem:[#allocation1] sm:$0xff pattern:$0x75316420]  ;;  %v336_v18 = vld.sshfl [vmem:[#allocation1 + $0x8] sm:$0xff pattern:$0x75316420] }
  0x4b   : > { %353 = vst [vmem:[#allocation1] ss:$2 sm:$0xff] %v971_v1  ;;  %v337_v19 = vld.sshfl [vmem:[#allocation1 + $0x10] sm:$0xff pattern:$0x75316420] }
  0x4c   : > { %367 = vst [vmem:[#allocation1 + $0x11] ss:$2 sm:$0xff] %v361_v16  ;;  %316 = vrot.lane.b32.xlu2 %v311_v15, %s861_s23  ;;  %v486_v15 = vld [vmem:[%s1079_s2] sm:$0xff]  ;;  %s202_s23 = scalar_lea.vmem [#allocation7], %s660_s10 }
  0x52   : > { %v354_v21 = vld.sshfl [vmem:[#allocation1] sm:$0xff pattern:$0x75316420]  ;;  %v355_v22 = vld.sshfl [vmem:[#allocation1 + $0x8] sm:$0xff pattern:$0x75316420] }
  0x53   : > { %365 = vst [vmem:[#allocation1 + $0x1] ss:$2 sm:$0xff] %v971_v1  ;;  %v370_v23 = vld.sshfl [vmem:[#allocation1 + $0x10] sm:$0xff pattern:$0x75316420] }
  0x54   : > { %358 = vst [vmem:[#allocation3 + $0x8] sm:$0xf] %v354_v21  ;;  %375 = vrot.lane.b32.xlu2 %v370_v23, %s862_s24 }
  0x55   : > { %359 = vst [vmem:[#allocation3 + $0x30] sm:$0xf] %v355_v22 }
  0x56   : > { %400 = vst [vmem:[#allocation1 + $0x10] ss:$2 sm:$0xff] %v391_v20 }
  0x5a   : > { %v369_v24 = vld.sshfl [vmem:[#allocation1 + $0x8] sm:$0xff pattern:$0x75316420]  ;;  %v368_v25 = vld.sshfl [vmem:[#allocation1] sm:$0xff pattern:$0x75316420] }
  0x5b   : > { %373 = vrot.lane.b32.xlu1 %v369_v24, %s862_s24  ;;  %371 = vrot.lane.b32.xlu0 %v368_v25, %s862_s24  ;;  %398 = vst [vmem:[#allocation1] ss:$2 sm:$0xff] %v242_v2  ;;  %s567_s24 = sshll.u32 %s202_s23, 4  ;;  %s568_s24 = int_to_ptr.vmem [resolvable:$true] %s567_s24 }
  0x5d   : > { %v403_v27 = vld.sshfl [vmem:[#allocation1 + $0x10] sm:$0xff pattern:$0x75316420] }
  0x5e   : > { %425 = vst [vmem:[#allocation1 + $0x10] ss:$2 sm:$0xff] %v420_v26  ;;  %408 = vrot.lane.b32.xlu2 %v403_v27, %s863_s28 }
  0x62   : > { %v402_v28 = vld.sshfl [vmem:[#allocation1 + $0x8] sm:$0xff pattern:$0x75316420]  ;;  %v401_v29 = vld.sshfl [vmem:[#allocation1] sm:$0xff pattern:$0x75316420] }
  0x63   : > { %406 = vrot.lane.b32.xlu1 %v402_v28, %s863_s28  ;;  %404 = vrot.lane.b32.xlu0 %v401_v29, %s863_s28  ;;  %423 = vst [vmem:[#allocation1] ss:$2 sm:$0xff] %v971_v1  ;;  %s569_s28 = sshll.u32 %s565_s22, 4  ;;  %s570_s28 = int_to_ptr.hbm [resolvable:$true] %s569_s28 }
  0x65   : > { %v428_v31 = vld.sshfl [vmem:[#allocation1 + $0x10] sm:$0xff pattern:$0x75316420] }
  0x66   : > { %456 = vst [vmem:[#allocation1 + $0x10] ss:$2 sm:$0xff] %v451_v30  ;;  %433 = vrot.lane.b32.xlu2 %v428_v31, %s864_s29 }
  0x6a   : > { %v426_v32 = vld.sshfl [vmem:[#allocation1] sm:$0xff pattern:$0x75316420]  ;;  %v427_v33 = vld.sshfl [vmem:[#allocation1 + $0x8] sm:$0xff pattern:$0x75316420] }
  0x6b   : > { %429 = vrot.lane.b32.xlu0 %v426_v32, %s864_s29  ;;  %454 = vst [vmem:[#allocation1] ss:$2 sm:$0xff] %v971_v1 }
  0x6d   : > { %v459_v34 = vld.sshfl [vmem:[#allocation1 + $0x10] sm:$0xff pattern:$0x75316420] }
  0x6e   : > { %464 = vrot.lane.b32.xlu1 %v459_v34, %s865_s30  ;;  %260 = vrot.lane.b32.xlu2 %v978_v7, %s866_s4 }
  0x72   : > { %v457_v35 = vld.sshfl [vmem:[#allocation1] sm:$0xff pattern:$0x75316420]  ;;  %v458_v36 = vld.sshfl [vmem:[#allocation1 + $0x8] sm:$0xff pattern:$0x75316420] }
  0x73   : > { %460 = vrot.lane.b32.xlu0 %v457_v35, %s865_s30 }
  0x76   : > { %431 = vrot.lane.b32.xlu1 %v427_v33, %s864_s29  ;;  %342 = vrot.lane.b32.xlu2 %v337_v19, %s867_s5  ;;  %s789_s29 = sshra.s32 %s570_s28, 4  ;;  %s790_s29 = int_to_ptr.hbm [resolvable:$true] %s789_s29 }
  0x77   : > { %p796_p7 = scmp.lt.s32.totalorder %s790_s29, %s1080_s3 }
  0x7b   : > { %462 = vrot.lane.b32.xlu0 %v458_v36, %s865_s30  ;;  %s791_s30 = scalar_lea.hbm %s790_s29, 16 }
  0x7c   : > { %p792_p4 = scmp.ne.s32.totalorder %s790_s29, %s791_s30  ;;  %p797_p8 = scmp.lt.s32.totalorder %s795_s6, %s791_s30 }
  0x7e   : > { %258 = vrot.lane.b32.xlu1 %v976_v6, %s866_s4  ;;  %p793_p5 = pnand %p792_p4, %p940_p9  ;;  %p798_p10 = por %p797_p8, %p796_p7 }
  0x80   : > { %p794_p6 = pneg %p793_p5 }
  0x82   : > { %p799_p13 = pnand %p798_p10, %p794_p6 }
  0x83   : > { %256 = vrot.lane.b32.xlu0 %v974_v5, %s866_s4 }
  0x86   : > { %340 = vrot.lane.b32.xlu1 %v336_v18, %s867_s5  ;;  %v868_v18 = vmov 0  }
  0x87   : > { %744 = vset.pattern.permute.xlu0 %v868_v18 }
  0x8b   : > { %338 = vrot.lane.b32.xlu0 %v335_v17, %s867_s5 }
  0x93   : > { %489 = vperm.xlu0 %744, %v486_v15  }
  0x96   : > { %v286_v37 = vpop.permute.xlu2 %285 }
  0x9e   : > { %v315_v40 = vpop.permute.xlu2 %314 }
  0xa6   : > { %v317_v43 = vpop.permute.xlu2 %316 }
  0xa7   : > { %v320_v45 = vsel %vm318_vm1, %v315_v40, %v317_v43 }
  0xa8   : > { %v324_v47 = vsel %vm988_vm2, %v320_v45, 0.0 }
  0xa9   : > { %326 = vst [vmem:[#allocation3 + $0x38] sm:$0xf] %v324_v47 }
  0xad   : > { %v284_v49 = vpop.permute.xlu1 %283  ;;  %v282_v50 = vpop.permute.xlu0 %281 }
  0xae   : > { %v289_v51 = vsel %vm287_vm3, %v284_v49, %v286_v37  ;;  %v288_v52 = vsel %vm287_vm3, %v282_v50, %v284_v49  ;;  %v376_v60 = vpop.permute.xlu2 %375 }
  0xaf   : > { %v293_v53 = vsel %vm988_vm2, %v289_v51, 0.0  ;;  %v292_v54 = vsel %vm995_vm4, %v288_v52, 0.0 }
  0xb0   : > { %v297_v55 = vrot.slane %v293_v53, 4  ;;  %v296_v56 = vrot.slane %v292_v54, 4 }
  0xb2   : > { %301 = vst [vmem:[#allocation3 + $0x10] sm:$0xf0] %v297_v55 }
  0xb3   : > { %300 = vst [vmem:[#allocation3 + $0x18] sm:$0xf0] %v296_v56 }
  0xb5   : > { %v313_v57 = vpop.permute.xlu1 %312 }
  0xb6   : > { %v319_v58 = vsel %vm318_vm1, %v313_v57, %v315_v40 }
  0xb7   : > { %v323_v59 = vsel %vm995_vm4, %v319_v58, 0.0 }
  0xb8   : > { %325 = vst [vmem:[#allocation3 + $0x48] sm:$0xf] %v323_v59  ;;  %v409_v1 = vpop.permute.xlu2 %408 }
  0xc0   : > { %v434_v12 = vpop.permute.xlu2 %433 }
  0xc8   : > { %v261_v23 = vpop.permute.xlu2 %260 }
  0xcd   : > { %v374_v61 = vpop.permute.xlu1 %373  ;;  %v372_v62 = vpop.permute.xlu0 %371 }
  0xce   : > { %v379_v63 = vsel %vm377_vm5, %v374_v61, %v376_v60  ;;  %v378_v0 = vsel %vm377_vm5, %v372_v62, %v374_v61 }
  0xcf   : > { %383 = vst [vmem:[#allocation3 + $0x38] sm:$0xf0] %v379_v63 }
  0xd0   : > { %382 = vst [vmem:[#allocation3 + $0x48] sm:$0xf0] %v378_v0  ;;  %v343_v34 = vpop.permute.xlu2 %342 }
  0xd5   : > { %v407_v4 = vpop.permute.xlu1 %406  ;;  %v405_v5 = vpop.permute.xlu0 %404 }
  0xd6   : > { %v412_v6 = vsel %vm410_vm6, %v407_v4, %v409_v1  ;;  %v411_v7 = vsel %vm410_vm6, %v405_v5, %v407_v4  ;;  %v483_v41 = vld [vmem:[#allocation3 + $0x38] sm:$0xff] }
  0xd7   : > { %v416_v8 = vsel %vm1006_vm7, %v412_v6, 0.0  ;;  %v415_v9 = vsel %vm1010_vm8, %v411_v7, 0.0  ;;  %v482_v40 = vld [vmem:[#allocation3 + $0x48] sm:$0xff] }
  0xd8   : > { %418 = vst [vmem:[#allocation3 + $0x10] sm:$0xf] %v416_v8 }
  0xd9   : > { %417 = vst [vmem:[#allocation3 + $0x18] sm:$0xf] %v415_v9 }
  0xdd   : > { %v430_v10 = vpop.permute.xlu0 %429 }
  0xdf   : > { %v479_v47 = vld [vmem:[#allocation3 + $0x10] sm:$0xff] }
  0xe0   : > { %v465_v11 = vpop.permute.xlu1 %464  ;;  %v478_v45 = vld [vmem:[#allocation3 + $0x18] sm:$0xff] }
  0xe5   : > { %v461_v13 = vpop.permute.xlu0 %460 }
  0xe8   : > { %v432_v14 = vpop.permute.xlu1 %431 }
  0xe9   : > { %v436_v16 = vsel %vm435_vm9, %v430_v10, %v432_v14  ;;  %v437_v17 = vsel %vm435_vm9, %v432_v14, %v434_v12 }
  0xea   : > { %v440_v19 = vsel %vm1010_vm8, %v436_v16, 0.0  ;;  %v441_v20 = vsel %vm1006_vm7, %v437_v17, 0.0 }
  0xeb   : > { %v444_v21 = vrot.slane %v440_v19, 4  ;;  %v445_v22 = vrot.slane %v441_v20, 4 }
  0xed   : > { %448 = vst [vmem:[#allocation3 + $0x8] sm:$0xf0] %v444_v21  ;;  %v463_v24 = vpop.permute.xlu0 %462 }
  0xee   : > { %449 = vst [vmem:[#allocation3 + $0x30] sm:$0xf0] %v445_v22  ;;  %v467_v25 = vsel %vm466_vm10, %v461_v13, %v463_v24  ;;  %v468_v26 = vsel %vm466_vm10, %v463_v24, %v465_v11 }
  0xef   : > { %v471_v27 = vsel %vm1010_vm8, %v467_v25, 0.0  ;;  %v472_v28 = vsel %vm1006_vm7, %v468_v26, 0.0 }
  0xf0   : > { %473 = vst [vmem:[#allocation3 + $0x40] sm:$0xf] %v471_v27  ;;  %v259_v29 = vpop.permute.xlu1 %258 }
  0xf1   : > { %474 = vst [vmem:[#allocation3 + $0x28] sm:$0xf] %v472_v28  ;;  %v264_v30 = vsel %vm262_vm11, %v259_v29, %v261_v23 }
  0xf2   : > { %v268_v31 = vsel %vm988_vm2, %v264_v30, 0.0 }
  0xf3   : > { %270 = vst [vmem:[#allocation3] sm:$0xf] %v268_v31 }
  0xf4   : > { %v480_v42 = vld [vmem:[#allocation3 + $0x8] sm:$0xff] }
  0xf5   : > { %v257_v32 = vpop.permute.xlu0 %256  ;;  %v481_v43 = vld [vmem:[#allocation3 + $0x30] sm:$0xff] }
  0xf6   : > { %v263_v33 = vsel %vm262_vm11, %v257_v32, %v259_v29 }
  0xf7   : > { %v267_v35 = vsel %vm995_vm4, %v263_v33, 0.0  ;;  %v484_v36 = vld [vmem:[#allocation3 + $0x40] sm:$0xf] }
  0xf8   : > { %269 = vst [vmem:[#allocation3 + $0x20] sm:$0xf] %v267_v35  ;;  %v341_v37 = vpop.permute.xlu1 %340  ;;  %661 = vmatpush.msk.msra.mxu0 %vm496_vm12, %v484_v36  ;;  %v485_v38 = vld [vmem:[#allocation3 + $0x28] sm:$0xf] }
  0xf9   : > { %v346_v39 = vsel %vm344_vm13, %v341_v37, %v343_v34  ;;  %663 = vmatpush.msk.msra.mxu1 %vm496_vm12, %v485_v38 }
  0xfa   : > { %350 = vst [vmem:[#allocation3] sm:$0xf0] %v346_v39  ;;  %515 = vmatpush.msra.mxu0 %v482_v40 }
  0xfb   : > { %535 = vmatpush.msra.mxu1 %v483_v41 }
  0xfc   : > { %516 = vmatpush.msra.mxu0 %v480_v42 }
  0xfd   : > { %536 = vmatpush.msra.mxu1 %v481_v43  ;;  %v339_v44 = vpop.permute.xlu0 %338 }
  0xfe   : > { %v345_v46 = vsel %vm344_vm13, %v339_v44, %v341_v37  ;;  %517 = vmatpush.msra.mxu0 %v478_v45 }
  0xff   : > { %349 = vst [vmem:[#allocation3 + $0x20] sm:$0xf0] %v345_v46  ;;  %537 = vmatpush.msra.mxu1 %v479_v47 }
 0x101   : > { %v477_v49 = vld [vmem:[#allocation3] sm:$0xff] }
 0x102   : > { %538 = vmatpush.msra.mxu1 %v477_v49 }
 0x103   : > { %664 = vmatmul.msk.f32.vlgmr.msra.gmra.mxu1 %vm492_vm14, %v475_v48 }
 0x105   : > { %v490_v51 = vpop.permute.xlu0 %489 }
 0x106   : > { %v476_v50 = vld [vmem:[#allocation3 + $0x20] sm:$0xff] }
 0x107   : > { %518 = vmatpush.msra.mxu0 %v476_v50 }
 0x108   : > { %662 = vmatmul.msk.f32.vlgmr.msra.gmra.mxu0 %vm492_vm14, %v475_v48 }
 0x180   : > { %v540_v52 = vpop.f32.mrf.mxu1 }
 0x181   : > { %v541_v53 = vadd.f32 %v540_v52, %v490_v51 }
 0x183   : > { %vm544_vm15 = vcmp.gt.f32.partialorder %v541_v53, 0.0  ;;  %v546_v54 = vmul.f32 0.2, %v541_v53 }
 0x185   : > { %v548_v55 = vsel %vm544_vm15, %v541_v53, %v546_v54  ;;  %v520_v56 = vpop.f32.mrf.mxu0 }
 0x186   : > { %550 = vst [vmem:[%s202_s23 + $0x8] sm:$0xff] %v548_v55  ;;  %v521_v57 = vadd.f32 %v520_v56, %v490_v51 }
 0x188   : > { %vm543_vm0 = vcmp.gt.f32.partialorder %v521_v57, 0.0  ;;  %v545_v58 = vmul.f32 0.2, %v521_v57 }
 0x18a   : > { %v547_v59 = vsel %vm543_vm0, %v521_v57, %v545_v58 }
 0x18b   : > { %549 = vst [vmem:[%s202_s23] sm:$0xff] %v547_v59 }
 0x18c   : > { %802 = shalt.err (!%p799_p13)
}
 0x18d   : > { %674 = dma.vmem_to_hbm [thread:$0]  (%p940_p9), %s568_s24, 256, %s570_s28, %s552_s15  }
 0x18e PF: > { %s581_s11 = sand.u32 1, %s837_s12   ;;  %p681_p0 = pnand %p654_p12, %p947_p11 }
 0x18f   : > { %s582_s9 = scalar_lea.sflag [#allocation6], %s581_s11 }
 0x190   : > { %p682_p1 = pneg %p681_p0 }
 0x192   : > { %832 = dma.done.wait (%p682_p1), %s582_s9, 256  }
 0x193   : > { %834 = vsyncadd (%p682_p1), %s582_s9, 4294967040  ;;  %s19_s17 = sadd.s32 1, %s857_s17   ;;  %s1093_s12 = smov %s841_s13 }
 0x194   : > { %p16_p2 = scmp.ge.s32.totalorder %s19_s17, 4   ;;  %s1094_s13 = smov %s845_s14 }
 0x195   : > { %s1095_s14 = smov %s945_s26  ;;  %s1096_s15 = smov %s853_s16 }
 0x196   : > { %s1097_s16 = smov %s1099_s20  ;;  %18 = sbr.rel (!%p16_p2) target bundleno = 6 (0x6), region = 87 }
 0x19b   :  { %588 = vsyncpa [#allocation5], 1 }
 0x19c   :  { %590 = vsyncpa [#allocation5 + $0x1], 1 }
 0x19d   :  { %591 = vsyncpa [#allocation6], 1 }
 0x19e   :  { %593 = vsyncpa [#allocation6 + $0x1], 1 }

</bundles_post_ra>
